<compile_context>
chip_gen: v7x
topology: tpu7x:2x2x1
jax: 0.10.0
libtpu: 0.0.40
codegen_flags: <defaults>
</compile_context>

<pallas_src>
import jax
import jax.numpy as jnp
from jax import lax
from jax.experimental import pallas as pl
from jax.experimental.pallas import tpu as pltpu


def _focal_pow(base, gamma):
    """(base)**gamma; repeated multiply for small integer gamma (avoids exp/log on EUP)."""
    g = float(gamma)
    if g.is_integer() and 0 <= g <= 8:
        n = int(g)
        if n == 0:
            return jnp.ones_like(base)
        out = base
        for _ in range(n - 1):
            out = out * base
        return out
    return jnp.power(base, g)


def _make_focal_kernel(*, C, tile_hw, hw, gamma, ignore_index, reduced_threshold,
                       has_weights, emit_loss, emit_psum, need_lsum, need_fsum):
    needs_mask = (hw % tile_hw) != 0   # only then does the tail tile read past HW
    # Padded tail columns are forced to ce == 0; for gamma > 0 (and reduced_threshold <= 1)
    # the focal term is then exactly 0, so sum(focal) stays clean without an explicit mask.
    focal_zero_at_ce0 = (float(gamma) > 0.0) and (
        reduced_threshold is None or float(reduced_threshold) <= 1.0)
    mask_focal = needs_mask and not focal_zero_at_ce0

    def kernel(*refs):
        it = iter(refs)
        x_ref = next(it)                              # (1, C, T)      logits (native dtype)
        t_ref = next(it)                              # (1, 1, T)      int32 targets
        w_ref = next(it) if has_weights else None     # (C, 1)         f32 class weights
        loss_ref = next(it) if emit_loss else None    # (1, 1, T)      f32 per-element loss
        psum_ref = next(it) if emit_psum else None    # (1, 1, 1, 128) f32 partial sums

        x = x_ref[0].astype(jnp.float32)              # (C, T): classes on sublanes
        t = t_ref[0]                                  # (1, T)

        # log-softmax over the class (sublane) axis, numerically stable.
        m = jnp.max(x, axis=0, keepdims=True)                               # (1, T)
        lse = jnp.log(jnp.sum(jnp.exp(x - m), axis=0, keepdims=True)) + m   # (1, T)

        # Gather target-class logit (and class weight) via a lane-broadcast one-hot compare.
        # NOTE: targets outside [0, C) that are not ignore_index silently yield loss 0
        # (PyTorch would raise) -- behavioral difference, not a numerical bug.
        cls = lax.broadcasted_iota(jnp.int32, (C, 1), 0)                    # (C, 1)
        onehot = cls == t                                                   # (C, T) mask
        x_t = jnp.sum(jnp.where(onehot, x, 0.0), axis=0, keepdims=True)     # (1, T)
        nll = lse - x_t                                                     # -log p_t >= 0
        if has_weights:
            w_t = jnp.sum(jnp.where(onehot, w_ref[...], 0.0), axis=0, keepdims=True)
            nll = nll * w_t

        valid = t != ignore_index
        if needs_mask:
            j = pl.program_id(1)
            col = lax.broadcasted_iota(jnp.int32, (1, tile_hw), 1)
            in_range = col < (hw - j * tile_hw)
            valid = jnp.logical_and(valid, in_range)

        ce = jnp.where(valid, nll, 0.0)               # == nll_loss(..., reduction='none')
        pt = jnp.exp(-ce)

        if reduced_threshold is None:
            focal = _focal_pow(1.0 - pt, gamma)
        else:
            focal = _focal_pow((1.0 - pt) / reduced_threshold, gamma)
            focal = jnp.where(pt < reduced_threshold, 1.0, focal)
        if mask_focal:
            focal = jnp.where(in_range, focal, 0.0)

        loss = focal * ce                             # (1, T)

        if emit_loss:
            loss_ref[0] = loss                        # lane-dense store
        if emit_psum:
            # One merged, 128-lane, unmasked store per step instead of two 1-lane stores.
            lane = lax.broadcasted_iota(jnp.int32, (1, 128), 1)
            vals = jnp.zeros((1, 128), jnp.float32)
            if need_lsum:
                vals = jnp.where(lane == 0, jnp.sum(loss), vals)
            if need_fsum:
                vals = jnp.where(lane == 1, jnp.sum(focal), vals)
            psum_ref[0, 0] = vals

    return kernel


def cross_entropy_focal_loss(inputs, targets, *, gamma=2.0, reduction="mean",
                             normalized=False, reduced_threshold=None,
                             ignore_index=-100, class_weights=None,
                             tile_hw=None, eps=1e-6):
    """inputs: [B,C,H,W] float, targets: [B,H,W] int — same convention as the nn.Module.

    Behavioral note: targets outside [0, C) that are not ignore_index produce loss 0
    (PyTorch raises a device-side assert instead).
    """
    if reduction not in ("mean", "sum", "none", "batchwise_mean"):
        raise ValueError(f"unsupported reduction: {reduction}")

    B, C, H, W = inputs.shape
    HW = H * W
    N = B * HW

    x = inputs
    if x.dtype not in (jnp.float32, jnp.bfloat16, jnp.float16):
        x = x.astype(jnp.float32)
    x = x.reshape(B, C, HW)                            # free view; no HBM transpose pass
    t = targets.reshape(B, 1, HW).astype(jnp.int32)
    # TODO(synk): int16/int8 targets would trim another ~5-10% of HBM read traffic for small C.

    has_weights = class_weights is not None
    emit_loss = reduction in ("none", "batchwise_mean")
    need_lsum = reduction in ("mean", "sum")
    need_fsum = bool(normalized)
    emit_psum = need_lsum or need_fsum

    # --- tile selection ------------------------------------------------------------------
    # Per-lane-column working set: double-buffered input + ~6 f32 (C,T) temporaries
    # (x_f32, exp(x-m), onehot, selects, ...) + the (1,T) target/loss buffers and row temps.
    x_item = jnp.dtype(x.dtype).itemsize
    per_col_bytes = C * (2 * x_item + 6 * 4) + 48

    if tile_hw is None:
        work_budget = 16 * 1024 * 1024                 # stays well inside a 32 MiB scoped limit
        t_cap = max(work_budget // per_col_bytes, 128)
        min_steps = 16                                 # >= ~8 steps per TensorCore on megacore
        min_tiles = max(-(-min_steps // B), 1)
        t_steps = max(HW // min_tiles, 128)
        tile_hw = max(min(t_cap, t_steps), 512)        # efficiency floor ~512 lanes
    if tile_hw >= HW:
        tile_hw = HW                                   # full lane extent (any size allowed)
    else:
        tile_hw = max((tile_hw // 128) * 128, 128)     # lane-aligned tile
    num_tiles = pl.cdiv(HW, tile_hw)
    grid = (B, num_tiles)

    # --- VMEM limit: generation-aware, <= half of physical VMEM --------------------------
    est_vmem = per_col_bytes * tile_hw + (2 << 20)
    try:
        phys_vmem = int(pltpu.get_tpu_info().vmem_capacity_bytes)
    except Exception:
        phys_vmem = 64 << 20                           # conservative default (v7x per-core)
    vmem_cap = min(phys_vmem // 2, 64 << 20)
    vmem_limit = int(min(max(32 << 20, est_vmem), vmem_cap))

    # --- specs ----------------------------------------------------------------------------
    def bct_map(b, j):                                 # (batch, class-block=0, spatial tile)
        return (b, 0, j)

    in_specs = [pl.BlockSpec((1, C, tile_hw), bct_map),
                pl.BlockSpec((1, 1, tile_hw), bct_map)]
    args = [x, t]
    if has_weights:
        w = jnp.asarray(class_weights, jnp.float32).reshape(C, 1)
        in_specs.append(pl.BlockSpec((C, 1), lambda b, j: (0, 0)))
        args.append(w)

    out_shape = []
    out_specs = []
    if emit_loss:
        out_shape.append(jax.ShapeDtypeStruct((B, 1, HW), jnp.float32))
        out_specs.append(pl.BlockSpec((1, 1, tile_hw), bct_map))
    if emit_psum:
        out_shape.append(jax.ShapeDtypeStruct((B, num_tiles, 1, 128), jnp.float32))
        out_specs.append(pl.BlockSpec((1, 1, 1, 128), lambda b, j: (b, j, 0, 0)))

    kernel = _make_focal_kernel(C=C, tile_hw=tile_hw, hw=HW, gamma=float(gamma),
                                ignore_index=int(ignore_index),
                                reduced_threshold=reduced_threshold,
                                has_weights=has_weights, emit_loss=emit_loss,
                                emit_psum=emit_psum, need_lsum=need_lsum,
                                need_fsum=need_fsum)

    results = pl.pallas_call(
        kernel,
        out_shape=tuple(out_shape),
        grid_spec=pltpu.PrefetchScalarGridSpec(
            num_scalar_prefetch=0,
            grid=grid,
            in_specs=in_specs,
            out_specs=out_specs,
        ),
        compiler_params=pltpu.CompilerParams(
            dimension_semantics=("parallel", "parallel"),  # no cross-step state
            vmem_limit_bytes=vmem_limit,
        ),
    )(*args)
    if not isinstance(results, (tuple, list)):
        results = (results,)
    results = list(results)
    loss_elem = results.pop(0) if emit_loss else None
    psum = results.pop(0) if emit_psum else None

    lsum = jnp.sum(psum[..., 0]) if need_lsum else None
    fsum = jnp.sum(psum[..., 1]) if need_fsum else None
    norm = jnp.maximum(fsum, jnp.float32(eps)) if normalized else None

    if reduction == "mean":
        total = lsum / norm if normalized else lsum
        return total / jnp.float32(N)
    if reduction == "sum":
        return lsum / norm if normalized else lsum

    loss_img = loss_elem.reshape(B, H, W)
    if normalized:                                      # skip the divide pass entirely if not
        loss_img = loss_img / norm
    if reduction == "none":
        return loss_img
    return loss_img.sum(axis=0)                         # batchwise_mean


def _reference_jax(inputs, targets, *, gamma=2.0, reduction="mean", normalized=False,
                   reduced_threshold=None, ignore_index=-100, class_weights=None, eps=1e-6):
    """Pure-JAX mirror of pytorch_toolbelt.softmax_focal_loss_with_logits (for checking)."""
    B, C, H, W = inputs.shape
    x = jnp.transpose(inputs, (0, 2, 3, 1)).reshape(-1, C).astype(jnp.float32)
    t = targets.reshape(-1)
    logp = jax.nn.log_softmax(x, axis=-1)
    t_safe = jnp.where(t == ignore_index, 0, t).astype(jnp.int32)
    logp_t = jnp.take_along_axis(logp, t_safe[:, None], axis=-1)[:, 0]
    w_t = 1.0 if class_weights is None else jnp.asarray(class_weights, jnp.float32)[t_safe]
    valid = t != ignore_index
    ce = jnp.where(valid, -w_t * logp_t, 0.0)
    pt = jnp.exp(-ce)
    if reduced_threshold is None:
        focal = (1.0 - pt) ** gamma
    else:
        focal = ((1.0 - pt) / reduced_threshold) ** gamma
        focal = jnp.where(pt < reduced_threshold, 1.0, focal)
    loss = focal * ce
    if normalized:
        loss = loss / jnp.maximum(jnp.sum(focal), eps)
    if reduction == "mean":
        return jnp.mean(loss)
    if reduction == "sum":
        return jnp.sum(loss)
    if reduction == "none":
        return loss.reshape(B, H, W)
    return loss.reshape(B, H, W).sum(axis=0)


if __name__ == "__main__":
    key = jax.random.PRNGKey(0)
    k1, k2, k3 = jax.random.split(key, 3)

    B, C, H, W = 2, 4, 16, 16
    inputs = jax.random.normal(k1, (B, C, H, W), jnp.float32)
    targets = jax.random.randint(k2, (B, H, W), 0, C, jnp.int32)
    targets = targets.at[0, 0, :4].set(-100)            # exercise ignore_index
    weights = jnp.array([0.5, 1.0, 2.0, 1.5], jnp.float32)

    # 1) default path: mean reduction, no weights
    out1 = jax.block_until_ready(cross_entropy_focal_loss(inputs, targets))
    ref1 = _reference_jax(inputs, targets)
    assert jnp.allclose(out1, ref1, rtol=1e-4, atol=1e-5), (out1, ref1)

    # 2) per-element loss, class weights, normalized
    out2 = jax.block_until_ready(cross_entropy_focal_loss(
        inputs, targets, reduction="none", normalized=True, class_weights=weights))
    ref2 = _reference_jax(inputs, targets, reduction="none", normalized=True,
                          class_weights=weights)
    assert out2.shape == (B, H, W)
    assert jnp.allclose(out2, ref2, rtol=1e-4, atol=1e-5), float(jnp.abs(out2 - ref2).max())

    # 3) bf16 logits, reduced-threshold, sum reduction, ragged spatial tiles (mask path)
    Hr, Wr = 10, 13
    in3 = jax.random.normal(k3, (B, C, Hr, Wr), jnp.float32)
    tg3 = jax.random.randint(k2, (B, Hr, Wr), 0, C, jnp.int32)
    out3 = jax.block_until_ready(cross_entropy_focal_loss(
        in3.astype(jnp.bfloat16), tg3, reduction="sum", reduced_threshold=0.5, tile_hw=128))
    ref3 = _reference_jax(in3.astype(jnp.bfloat16).astype(jnp.float32), tg3,
                          reduction="sum", reduced_threshold=0.5)
    assert jnp.allclose(out3, ref3, rtol=5e-4, atol=1e-4), (out3, ref3)

    # 4) ragged per-element loss, no normalization (OOB-masked store + skip-norm path)
    out4 = jax.block_until_ready(cross_entropy_focal_loss(
        in3, tg3, reduction="none", tile_hw=128))
    ref4 = _reference_jax(in3, tg3, reduction="none")
    assert out4.shape == (B, Hr, Wr)
    assert jnp.allclose(out4, ref4, rtol=1e-4, atol=1e-5), float(jnp.abs(out4 - ref4).max())

    # 5) batchwise_mean, normalized
    out5 = jax.block_until_ready(cross_entropy_focal_loss(
        inputs, targets, reduction="batchwise_mean", normalized=True))
    ref5 = _reference_jax(inputs, targets, reduction="batchwise_mean", normalized=True)
    assert out5.shape == (H, W)
    assert jnp.allclose(out5, ref5, rtol=1e-4, atol=1e-5), float(jnp.abs(out5 - ref5).max())

    print("KERNEL_OK")
</pallas_src>

<mosaic_0001>
module attributes {stable_mosaic.version = 11 : i64} {
  func.func @kernel(%arg0: i32, %arg1: i32, %arg2: memref<1x4x256xf32, #tpu.memory_space<vmem>>, %arg3: memref<1x1x256xi32, #tpu.memory_space<vmem>>, %arg4: memref<1x1x1x128xf32, #tpu.memory_space<vmem>>) attributes {dimension_semantics = [#tpu.dimension_semantics<parallel>, #tpu.dimension_semantics<parallel>], iteration_bounds = array<i64: 2, 1>, scalar_prefetch = 0 : i64, scratch_operands = 0 : i64, tpu.core_type = #tpu.core_type<tc>, window_params = [{transform_indices = @transform_0, window_bounds = array<i64: 1, 4, 256>}, {transform_indices = @transform_1, window_bounds = array<i64: 1, 1, 256>}, {transform_indices = @transform_2, window_bounds = array<i64: 1, 1, 1, 128>}]} {
    %c0 = arith.constant 0 : index
    %c0_0 = arith.constant 0 : index
    %c0_1 = arith.constant 0 : index
    %0 = vector.load %arg2[%c0, %c0_0, %c0_1] : memref<1x4x256xf32, #tpu.memory_space<vmem>>, vector<1x4x256xf32>
    %1 = vector.shape_cast %0 : vector<1x4x256xf32> to vector<4x256xf32>
    %c0_2 = arith.constant 0 : index
    %c0_3 = arith.constant 0 : index
    %c0_4 = arith.constant 0 : index
    %2 = vector.load %arg3[%c0_2, %c0_3, %c0_4] : memref<1x1x256xi32, #tpu.memory_space<vmem>>, vector<1x1x256xi32>
    %3 = vector.shape_cast %2 : vector<1x1x256xi32> to vector<1x256xi32>
    %cst = arith.constant dense<0xFF800000> : vector<256xf32>
    %4 = vector.multi_reduction <maximumf>, %1, %cst [0] : vector<4x256xf32> to vector<256xf32>
    %5 = vector.shape_cast %4 : vector<256xf32> to vector<1x256xf32>
    %6 = vector.broadcast %5 : vector<1x256xf32> to vector<4x256xf32>
    %7 = arith.subf %1, %6 : vector<4x256xf32>
    %8 = math.exp %7 : vector<4x256xf32>
    %cst_5 = arith.constant dense<0.000000e+00> : vector<256xf32>
    %9 = vector.multi_reduction <add>, %8, %cst_5 [0] : vector<4x256xf32> to vector<256xf32>
    %10 = vector.shape_cast %9 : vector<256xf32> to vector<1x256xf32>
    %11 = math.log %10 : vector<1x256xf32>
    %12 = arith.addf %11, %5 : vector<1x256xf32>
    %13 = tpu.iota {dimensions = array<i32: 0>} : vector<4x1xi32>
    %14 = vector.broadcast %13 : vector<4x1xi32> to vector<4x256xi32>
    %15 = vector.broadcast %3 : vector<1x256xi32> to vector<4x256xi32>
    %16 = arith.cmpi eq, %14, %15 : vector<4x256xi32>
    %cst_6 = arith.constant 0.000000e+00 : f32
    %17 = vector.broadcast %cst_6 : f32 to vector<4x256xf32>
    %18 = arith.select %16, %1, %17 : vector<4x256xi1>, vector<4x256xf32>
    %cst_7 = arith.constant dense<0.000000e+00> : vector<256xf32>
    %19 = vector.multi_reduction <add>, %18, %cst_7 [0] : vector<4x256xf32> to vector<256xf32>
    %20 = vector.shape_cast %19 : vector<256xf32> to vector<1x256xf32>
    %21 = arith.subf %12, %20 : vector<1x256xf32>
    %c-100_i32 = arith.constant -100 : i32
    %22 = vector.broadcast %c-100_i32 : i32 to vector<1x256xi32>
    %23 = arith.cmpi ne, %3, %22 : vector<1x256xi32>
    %cst_8 = arith.constant 0.000000e+00 : f32
    %24 = vector.broadcast %cst_8 : f32 to vector<1x256xf32>
    %25 = arith.select %23, %21, %24 : vector<1x256xi1>, vector<1x256xf32>
    %cst_9 = arith.constant 0.000000e+00 : f32
    %26 = vector.broadcast %cst_9 : f32 to vector<1x256xf32>
    %27 = arith.subf %26, %25 : vector<1x256xf32>
    %28 = math.exp %27 : vector<1x256xf32>
    %cst_10 = arith.constant 1.000000e+00 : f32
    %29 = vector.broadcast %cst_10 : f32 to vector<1x256xf32>
    %30 = arith.subf %29, %28 : vector<1x256xf32>
    %31 = arith.mulf %30, %30 : vector<1x256xf32>
    %32 = arith.mulf %31, %25 : vector<1x256xf32>
    %33 = tpu.iota {dimensions = array<i32: 1>} : vector<1x128xi32>
    %cst_11 = arith.constant 0.000000e+00 : f32
    %34 = vector.broadcast %cst_11 : f32 to vector<1x128xf32>
    %c0_i32 = arith.constant 0 : i32
    %35 = vector.broadcast %c0_i32 : i32 to vector<1x128xi32>
    %36 = arith.cmpi eq, %33, %35 : vector<1x128xi32>
    %37 = vector.shape_cast %32 : vector<1x256xf32> to vector<1x1x256xf32>
    %cst_12 = arith.constant dense<0.000000e+00> : vector<1xf32>
    %38 = vector.multi_reduction <add>, %37, %cst_12 [1, 2] : vector<1x1x256xf32> to vector<1xf32>
    %39 = vector.shape_cast %38 : vector<1xf32> to vector<1x1x1xf32>
    %40 = vector.extract %39[0, 0, 0] : f32 from vector<1x1x1xf32>
    %41 = vector.broadcast %40 : f32 to vector<1x128xf32>
    %42 = arith.select %36, %41, %34 : vector<1x128xi1>, vector<1x128xf32>
    %c0_13 = arith.constant 0 : index
    %c0_14 = arith.constant 0 : index
    %c0_15 = arith.constant 0 : index
    %c0_16 = arith.constant 0 : index
    %43 = vector.load %arg4[%c0_13, %c0_14, %c0_15, %c0_16] : memref<1x1x1x128xf32, #tpu.memory_space<vmem>>, vector<1x1x1x128xf32>
    %44 = vector.shape_cast %43 : vector<1x1x1x128xf32> to vector<1x128xf32>
    %45 = vector.shape_cast %42 : vector<1x128xf32> to vector<1x1x1x128xf32>
    tpu.vector_store %arg4[%c0_13, %c0_14, %c0_15, %c0_16], %45 {strides = array<i32>} : memref<1x1x1x128xf32, #tpu.memory_space<vmem>>, vector<1x1x1x128xf32>,
    return
  }
  func.func @transform_0(%arg0: i32, %arg1: i32) -> (i32, i32, i32) {
    %c0_i32 = arith.constant 0 : i32
    %c0_i32_0 = arith.constant 0 : i32
    return %arg0, %c0_i32, %arg1 : i32, i32, i32
  }
  func.func @transform_1(%arg0: i32, %arg1: i32) -> (i32, i32, i32) {
    %c0_i32 = arith.constant 0 : i32
    %c0_i32_0 = arith.constant 0 : i32
    return %arg0, %c0_i32, %arg1 : i32, i32, i32
  }
  func.func @transform_2(%arg0: i32, %arg1: i32) -> (i32, i32, i32, i32) {
    %c0_i32 = arith.constant 0 : i32
    %c0_i32_0 = arith.constant 0 : i32
    %c0_i32_1 = arith.constant 0 : i32
    return %arg0, %arg1, %c0_i32, %c0_i32_0 : i32, i32, i32, i32
  }
}

</mosaic_0001>

<bundles_post_ra>
// kernel: tpu_custom_call.1
= control target key start
LH: loop header
LB: loop body
LE: loop exit
PB: predicated region body
PF: predicated region fallthrough
CT: control target
= control target key end

     0   :  { %7 = vsyncpa [#allocation3], 0  ;;  %s978_s0 = inlined_call_operand.hbm [shape: f32[2,4,256], index: 0, kind: input, shape index: {}]   ;;  %s979_s1 = inlined_call_operand.hbm [shape: s32[2,1,256], index: 1, kind: input, shape index: {}]   ;;  %s980_s2 = inlined_call_operand.hbm [shape: f32[2,1,1,128], index: 2, kind: output, shape index: {}]  }
   0x1   :  { %9 = vsyncpa [#allocation3 + $0x1], 0 }
   0x2   :  { %10 = vsyncpa [#allocation6], 0 }
   0x3   :  { %12 = vsyncpa [#allocation6 + $0x1], 0 }
   0x4   :  { %13 = vsyncpa [#allocation4], 0 }
   0x5   :  { %15 = vsyncpa [#allocation4 + $0x1], 0  ;;  %s739_s9 = smov 0   ;;  %s741_s10 = smov 0  }
   0x6   :  { %s743_s11 = smov 0   ;;  %s745_s12 = smov 0  }
   0x7   :  { %s747_s13 = smov 0   ;;  %s749_s14 = smov 0  }
   0x8 LB: > { %s475_s15 = sadd.s32 4294967295, %s718_s14   ;;  %s476_s16 = sadd.s32 4294967294, %s718_s14   ;;  %s718_s14 = sphi %s749_s14, %s21_s14   ;;  %s714_s13 = sphi %s747_s13, %s1000_s13   ;;  %s710_s12 = sphi %s745_s12, %s999_s12   ;;  %s706_s11 = sphi %s743_s11, %s998_s11   ;;  %s702_s10 = sphi %s741_s10, %s997_s10   ;;  %s698_s9 = sphi %s739_s9, %s996_s9  }
   0x9   : > { %s33_s17 = sadd.s32 1, %s714_s13  ;;  %s42_s18 = sadd.s32 1, %s706_s11 }
   0xa   : > { %p35_p0 = scmp.ge.s32.totalorder %s33_s17, 2  ;;  %p49_p1 = scmp.ne.s32.totalorder %s706_s11, %s702_s10 }
   0xb   : > { %p50_p2 = scmp.eq.s32.totalorder %s718_s14, 0  ;;  %p55_p3 = scmp.ne.s32.totalorder %s702_s10, %s698_s9 }
   0xc   : > { %s1002_s17 = smov (%p35_p0, %s33_s17), 0  ;;  %p56_p5 = scmp.eq.s32.totalorder %s475_s15, 0 }
   0xd   : > { %p780_p4 = por %p50_p2, %p49_p1  ;;  %s37_s20 = ssub.s32 %s714_s13, %s1002_s17 }
   0xe   : > { %p109_p6 = scmp.eq.s32.totalorder %s475_s15, 1  ;;  %p40_p7 = scmp.eq.s32.totalorder %s37_s20, 0 }
   0xf   : > { %p786_p8 = por %p56_p5, %p55_p3  ;;  %p115_p10 = scmp.eq.s32.totalorder %s476_s16, 1 }
  0x10   : > { %p790_p9 = por %p109_p6, %p49_p1  ;;  %p512_p13 = scmp.lt.s32.totalorder %s718_s14, 2 }
  0x11   : > { %s984_s21 = scalar_select %p786_p8, 1, 0 }
  0x12   : > { %s985_s22 = scalar_select %p790_p9, 1, 0 }
  0x13   : > { %s795_s23 = scalar_select %p40_p7, %s706_s11, %s42_s18  }
  0x14   : > { %p797_p11 = por %p115_p10, %p55_p3  ;;  %s804_s25 = sand.u32 1, %s706_s11  }
  0x15   : > { %s479_s26 = sshll.u32 %s804_s25, 3  ;;  %s491_s27 = sshll.u32 %s714_s13, 7 }
  0x16   : > { %s986_s24 = scalar_select %p797_p11, 1, 0 }
  0x17   : > { %s811_s30 = scalar_lea.hbm %s978_s0, %s491_s27  ;;  %s139_s3 = scalar_lea.vmem [#allocation2], %s479_s26 }
  0x18   : > { %s149_s4 = sshll.u32 %s139_s3, 4  ;;  %p817_p0 = pnand %p512_p13, %p780_p4  ;;  %s813_s4 = int_to_ptr.vmem [resolvable:$true] %s149_s4 }
  0x19   : > { %s136_s6 = scalar_lea.sflag [#allocation3], %s804_s25  ;;  %s572_s7 = scalar_lea.hbm %s811_s30, 128 }
  0x1a   : > { %p573_p3 = scmp.ne.s32.totalorder %s811_s30, %s572_s7  ;;  %p574_p5 = pneg %p817_p0 }
  0x1b   : > { %s577_s16 = scalar_lea.hbm %s978_s0, 256  ;;  %p578_p4 = scmp.lt.u32.totalorder %s811_s30, %s978_s0 }
  0x1c   : > { %p575_p6 = pnand %p574_p5, %p573_p3  ;;  %p579_p10 = scmp.lt.u32.totalorder %s577_s16, %s572_s7 }
  0x1d   : > { %p581_p12 = scmp.lt.u32.totalorder %s572_s7, %s811_s30 }
  0x1e   : > { %p576_p7 = pneg %p575_p6  ;;  %p580_p13 = por %p579_p10, %p578_p4 }
  0x20   : > { %p582_p1 = por %p581_p12, %p580_p13 }
  0x22   : > { %p583_p2 = pnand %p582_p1, %p576_p7 }
  0x24   : > { %586 = shalt.err (!%p583_p2)
}
  0x25   : > { %s587_s20 = scalar_lea.vmem %s813_s4, 128  ;;  %s720_s26 = smov [#allocation2]  }
  0x26   : > { %p588_p3 = scmp.ne.s32.totalorder %s813_s4, %s587_s20  ;;  %s592_s27 = sshll.u32 %s720_s26, 4  ;;  %s593_s27 = int_to_ptr.vmem [resolvable:$false] %s592_s27 }
  0x27   : > { %s594_s28 = scalar_lea.vmem %s593_s27, 256  ;;  %p595_p9 = scmp.lt.s32.totalorder %s813_s4, %s593_s27 }
  0x28   : > { %p590_p6 = pnand %p588_p3, %p574_p5  ;;  %p596_p4 = scmp.lt.s32.totalorder %s594_s28, %s587_s20 }
  0x2a   : > { %p591_p11 = pneg %p590_p6  ;;  %p597_p10 = por %p596_p4, %p595_p9 }
  0x2c   : > { %p598_p12 = pnand %p597_p10, %p591_p11 }
  0x2e   : > { %601 = shalt.err (!%p598_p12)
}
  0x2f   : > { %504 = dma.hbm_to_vmem [thread:$0]  (!%p817_p0), %s811_s30, 128, %s813_s4, %s136_s6  }
  0x30   : > { %p988_p1 = scmp.lt.s32.totalorder %s718_s14, 3  ;;  %p989_p2 = scmp.ge.s32.totalorder %s718_s14, 1 }
  0x31   : > { %s482_s3 = sshll.u32 %s804_s25, 1  ;;  %s492_s7 = sshll.u32 %s714_s13, 5 }
  0x32   : > { %p853_p7 = pnand %p989_p2, %p988_p1  ;;  %s862_s16 = scalar_lea.hbm %s979_s1, %s492_s7 }
  0x33   : > { %s160_s18 = scalar_lea.vmem [#allocation5], %s482_s3  ;;  %s157_s30 = scalar_lea.sflag [#allocation6], %s804_s25 }
  0x34   : > { %s990_s29 = scalar_select %p853_p7, 1, 0 }
  0x35   : > { %s170_s19 = sshll.u32 %s160_s18, 4  ;;  %s602_s4 = scalar_lea.hbm %s862_s16, 32  ;;  %s171_s19 = int_to_ptr.vmem [resolvable:$true] %s170_s19 }
  0x36   : > { %p603_p9 = scmp.ne.s32.totalorder %s862_s16, %s602_s4  ;;  %s607_s26 = scalar_lea.hbm %s979_s1, 64 }
  0x37   : > { %p608_p3 = scmp.lt.u32.totalorder %s862_s16, %s979_s1  ;;  %p609_p6 = scmp.lt.u32.totalorder %s607_s26, %s602_s4 }
  0x38   : > { %p605_p11 = pnand %p603_p9, %p574_p5  ;;  %p611_p10 = scmp.lt.u32.totalorder %s602_s4, %s862_s16 }
  0x39   : > { %p610_p4 = por %p609_p6, %p608_p3 }
  0x3a   : > { %p606_p13 = pneg %p605_p11 }
  0x3b   : > { %p612_p12 = por %p611_p10, %p610_p4 }
  0x3d   : > { %p613_p1 = pnand %p612_p12, %p606_p13 }
  0x3f   : > { %616 = shalt.err (!%p613_p1)
}
  0x40   : > { %s617_s25 = scalar_lea.vmem %s171_s19, 32  ;;  %s721_s3 = smov [#allocation5]  }
  0x41   : > { %p618_p2 = scmp.ne.s32.totalorder %s171_s19, %s617_s25  ;;  %s622_s7 = sshll.u32 %s721_s3, 4  ;;  %s623_s7 = int_to_ptr.vmem [resolvable:$false] %s622_s7 }
  0x42   : > { %s624_s8 = scalar_lea.vmem %s623_s7, 64  ;;  %p625_p8 = scmp.lt.s32.totalorder %s171_s19, %s623_s7 }
  0x43   : > { %p620_p9 = pnand %p618_p2, %p574_p5  ;;  %p626_p7 = scmp.lt.s32.totalorder %s624_s8, %s617_s25 }
  0x45   : > { %p621_p11 = pneg %p620_p9  ;;  %p627_p3 = por %p626_p7, %p625_p8 }
  0x47   : > { %p628_p6 = pnand %p627_p3, %p621_p11 }
  0x49   : > { %631 = shalt.err (!%p628_p6)
}
  0x4a   : > { %507 = dma.hbm_to_vmem [thread:$0]  (!%p817_p0), %s862_s16, 32, %s171_s19, %s157_s30  }
  0x4b   : > { %p991_p13 = scmp.ne.s32.totalorder %s990_s29, 0 }
  0x4c   : > { %s887_s15 = sand.u32 (!%p991_p13), 1, %s702_s10   ;;  %p992_p5 = scmp.ne.s32.totalorder (!%p991_p13), %s984_s21, 0 }
  0x4d   : > { %179 = sbr.rel (%p991_p13) target bundleno = 406 (0x196), region = 28  ;;  %s486_s18 = sshll.u32 (!%p991_p13), %s887_s15, 3 }
  0x4e   : > { %s182_s4 = scalar_lea.sflag (!%p991_p13), [#allocation3], %s887_s15  ;;  %s185_s6 = scalar_lea.vmem (!%p991_p13), [#allocation2], %s486_s18 }
  0x54   : > { %685 = dma.done.wait (%p992_p5), %s182_s4, 128  }
  0x55   : > { %687 = vsyncadd (%p992_p5), %s182_s4, 4294967168  ;;  %s487_s5 = sshll.u32 %s887_s15, 1  ;;  %s191_s29 = scalar_lea.sflag [#allocation6], %s887_s15 }
  0x56   : > { %s194_s16 = scalar_lea.vmem [#allocation5], %s487_s5 }
  0x57   : > { %689 = dma.done.wait (%p992_p5), %s191_s29, 32  }
  0x58   : > { %691 = vsyncadd (%p992_p5), %s191_s29, 4294967264  ;;  %vm226_vm0 = vcmask 1043456   ;;  %v221_v0 = vld [vmem:[%s185_s6] sm:$0xff]  ;;  %v271_v15 = vlaneseq  ;;  %v222_v22 = vld [vmem:[%s194_s16] sm:$0x3]  ;;  %vm341_vm4 = vcmask 1040384  }
  0x59   : > { %v224_v1 = vcombine.high %v221_v0, %v221_v0  ;;  %v227_v2 = vsel %vm226_vm0, %v221_v0, -inf  ;;  %v722_v56 = vmov 1966171168   ;;  %vm301_vm3 = vcmp.ne.s32.totalorder %v222_v22, 4294967196  ;;  %s488_s21 = sshll.u32 %s710_s12, 4  ;;  %s218_s19 = scalar_lea.vmem [#allocation7], %s887_s15 }
  0x5a   : > { %v228_v3 = vrot.slane %v227_v2, 4  ;;  %v904_v18 = vshrl.u32 %v271_v15, 7  ;;  %v306_v57 = vunpack.c.l.s4 %v722_v56  ;;  %s371_s30 = sshll.u32 %s218_s19, 4  ;;  %s929_s28 = scalar_lea.hbm %s980_s2, %s488_s21  ;;  %s931_s30 = int_to_ptr.vmem [resolvable:$true] %s371_s30 }
  0x5b   : > { %v234_v4 = vsel %vm226_vm0, %v224_v1, -inf  ;;  %s358_s25 = scalar_lea.sflag [#allocation4], %s887_s15  ;;  %s632_s3 = scalar_lea.vmem %s931_s30, 16 }
  0x5c   : > { %v229_v5 = vmax.f32 %v227_v2, %v228_v3  ;;  %v235_v6 = vrot.slane %v234_v4, 4  ;;  %v275_v21 = vsub.s32 0, %v904_v18  ;;  %v279_v23 = vsub.s32 1, %v904_v18  ;;  %p633_p8 = scmp.ne.s32.totalorder %s931_s30, %s632_s3  ;;  %p993_p0 = scmp.ne.s32.totalorder %s985_s22, 0 }
  0x5d   : > { %s723_s12 = smov [#allocation7]  }
  0x5e   : > { %v230_v7 = vrot.slane %v229_v5, 2  ;;  %v236_v8 = vmax.f32 %v234_v4, %v235_v6  ;;  %v276_v24 = vrot.slane %v222_v22, %v275_v21  ;;  %v280_v25 = vrot.slane %v222_v22, %v279_v23  ;;  %p634_p7 = pnand %p633_p8, %p993_p0  ;;  %s636_s7 = sshll.u32 %s723_s12, 4  ;;  %s637_s7 = int_to_ptr.vmem [resolvable:$false] %s636_s7 }
  0x5f   : > { %s638_s8 = scalar_lea.vmem %s637_s7, 32  ;;  %p639_p10 = scmp.lt.s32.totalorder %s931_s30, %s637_s7 }
  0x60   : > { %v231_v9 = vmax.f32 %v229_v5, %v230_v7  ;;  %v237_v10 = vrot.slane %v236_v8, 2  ;;  %vm281_vm1 = vcmp.eq.s32.totalorder %v904_v18, %v276_v24  ;;  %vm282_vm2 = vcmp.eq.s32.totalorder %v904_v18, %v280_v25  ;;  %p635_p4 = pneg %p634_p7  ;;  %p640_p12 = scmp.lt.s32.totalorder %s638_s8, %s632_s3 }
  0x61   : > { %v283_v26 = vsel %vm281_vm1, %v221_v0, 0.0  ;;  %v284_v30 = vsel %vm282_vm2, %v224_v1, 0.0  ;;  %v307_v1 = vunpack.c.0.s8 %v306_v57 }
  0x62   : > { %v232_v11 = vrot.slane %v231_v9, 1  ;;  %v238_v12 = vmax.f32 %v236_v8, %v237_v10  ;;  %v285_v32 = vsel %vm226_vm0, %v283_v26, 0.0  ;;  %v292_v36 = vsel %vm226_vm0, %v284_v30, 0.0  ;;  %p641_p1 = por %p640_p12, %p639_p10 }
  0x63   : > { %v286_v37 = vrot.slane %v285_v32, 4  ;;  %v293_v40 = vrot.slane %v292_v36, 4  ;;  %v310_v5 = vsub.s32 %v307_v1, %v904_v18 }
  0x64   : > { %v233_v13 = vmax.f32 %v231_v9, %v232_v11  ;;  %v239_v14 = vrot.slane %v238_v12, 1  ;;  %p642_p2 = pnand %p641_p1, %p635_p4 }
  0x65   : > { %v287_v43 = vadd.f32 %v286_v37, %v285_v32  ;;  %v294_v46 = vadd.f32 %v293_v40, %v292_v36 }
  0x66   : > { %v240_v16 = vmax.f32 %v238_v12, %v239_v14 }
  0x67   : > { %v288_v49 = vrot.slane %v287_v43, 2  ;;  %v295_v51 = vrot.slane %v294_v46, 2 }
  0x68   : > { %v243_v17 = vcombine.low %v233_v13, %v240_v16 }
  0x69   : > { %v289_v52 = vadd.f32 %v288_v49, %v287_v43  ;;  %v296_v53 = vadd.f32 %v295_v51, %v294_v46 }
  0x6a   : > { %v245_v19 = vsub.f32 %v221_v0, %v243_v17 }
  0x6b   : > { %v290_v54 = vrot.slane %v289_v52, 1  ;;  %v297_v55 = vrot.slane %v296_v53, 1 }
  0x6c   : > { %v246_v20 = vmul.f32 1.442695, %v245_v19 }
  0x6d   : > { %v291_v60 = vadd.f32 %v290_v54, %v289_v52  ;;  %v298_v0 = vadd.f32 %v297_v55, %v296_v53 }
  0x6e   : > { %564 = vpow2.f32 %v246_v20 }
  0x78   : > { %v565_v27 = vpop.eup %564 }
  0x79   : > { %v249_v28 = vcombine.high %v565_v27, %v565_v27  ;;  %v251_v29 = vsel %vm226_vm0, %v565_v27, 0.0 }
  0x7a   : > { %v252_v31 = vrot.slane %v251_v29, 4 }
  0x7b   : > { %v258_v33 = vsel %vm226_vm0, %v249_v28, 0.0 }
  0x7c   : > { %v253_v34 = vadd.f32 %v252_v31, %v251_v29  ;;  %v259_v35 = vrot.slane %v258_v33, 4 }
  0x7e   : > { %v254_v38 = vrot.slane %v253_v34, 2  ;;  %v260_v39 = vadd.f32 %v259_v35, %v258_v33 }
  0x80   : > { %v255_v41 = vadd.f32 %v254_v38, %v253_v34  ;;  %v261_v42 = vrot.slane %v260_v39, 2 }
  0x82   : > { %v256_v44 = vrot.slane %v255_v41, 1  ;;  %v262_v45 = vadd.f32 %v261_v42, %v260_v39 }
  0x84   : > { %v257_v47 = vadd.f32 %v256_v44, %v255_v41  ;;  %v263_v48 = vrot.slane %v262_v45, 1 }
  0x86   : > { %v264_v50 = vadd.f32 %v263_v48, %v262_v45  ;;  %566 = vlog2.f32 %v257_v47 }
  0x88   : > { %568 = vlog2.f32 %v264_v50 }
  0x90   : > { %v567_v58 = vpop.eup %566 }
  0x91   : > { %v266_v59 = vmul.f32 0.6931472, %v567_v58 }
  0x92   : > { %v569_v61 = vpop.eup %568 }
  0x93   : > { %v268_v62 = vmul.f32 0.6931472, %v569_v61  ;;  %v269_v63 = vadd.f32 %v266_v59, %v233_v13 }
  0x95   : > { %v270_v2 = vadd.f32 %v268_v62, %v240_v16  ;;  %v299_v3 = vsub.f32 %v269_v63, %v291_v60 }
  0x97   : > { %v300_v4 = vsub.f32 %v270_v2, %v298_v0 }
  0x99   : > { %v304_v6 = vcombine.low %v299_v3, %v300_v4 }
  0x9b   : > { %v311_v7 = vrot.slane %v304_v6, %v310_v5 }
  0x9d   : > { %v318_v8 = vrot.slane %v311_v7, %v310_v5 }
  0x9f   : > { %v320_v9 = vsel %vm301_vm3, %v318_v8, 0.0 }
  0xa0   : > { %v321_v10 = vsub.f32 0.0, %v320_v9 }
  0xa2   : > { %v322_v11 = vmul.f32 1.442695, %v321_v10 }
  0xa4   : > { %570 = vpow2.f32 %v322_v11 }
  0xae   : > { %v571_v12 = vpop.eup %570 }
  0xaf   : > { %v324_v14 = vsub.f32 1.0, %v571_v12 }
  0xb1   : > { %v325_v17 = vmul.f32 %v324_v14, %v324_v14 }
  0xb3   : > { %v326_v19 = vmul.f32 %v325_v17, %v320_v9 }
  0xb5   : > { %v334_v13 = vrot.slane %v326_v19, %v275_v21  ;;  %v338_v16 = vrot.slane %v326_v19, %v279_v23  ;;  %v328_v21 = vand.u32 127, %v271_v15 }
  0xb7   : > { %v342_v20 = vsel %vm341_vm4, %v334_v13, 0.0  ;;  %v343_v22 = vsel %vm341_vm4, %v338_v16, 0.0  ;;  %vm329_vm5 = vcmp.eq.s32.totalorder %v328_v21, 0 }
  0xb8   : > { %v344_v24 = vadd.f32 %v343_v22, %v342_v20 }
  0xba   : > { %345 = vadd.xlane.f32.xlu0 %v344_v24 }
 0x147   : > { %v346_v25 = vpop.xlane.xlu0 %345 }
 0x148   : > { %v347_v26 = vrot.slane %v346_v25, 4 }
 0x14a   : > { %v348_v27 = vadd.f32 %v347_v26, %v346_v25 }
 0x14c   : > { %v349_v28 = vrot.slane %v348_v27, 2 }
 0x14e   : > { %v350_v29 = vadd.f32 %v349_v28, %v348_v27 }
 0x150   : > { %v351_v30 = vrot.slane %v350_v29, 1 }
 0x152   : > { %v352_v31 = vadd.f32 %v351_v30, %v350_v29 }
 0x154   : > { %493 = vpush %v352_v31 }
 0x185   : > { %s494_s20 = spop %493 }
 0x186   : > { %v354_v18 = vstv %s494_s20 }
 0x187   : > { %v355_v23 = vsel %vm329_vm5, %v354_v18, 0.0 }
 0x188   : > { %356 = vst [vmem:[%s218_s19] sm:$0x1] %v355_v23 }
 0x189   : > { %645 = shalt.err (!%p642_p2)
}
 0x18a   : > { %s646_s15 = scalar_lea.hbm %s929_s28, 16  ;;  %s650_s6 = scalar_lea.hbm %s980_s2, 32 }
 0x18b   : > { %p647_p9 = scmp.ne.s32.totalorder %s929_s28, %s646_s15  ;;  %p651_p6 = scmp.lt.u32.totalorder %s929_s28, %s980_s2 }
 0x18c   : > { %p652_p13 = scmp.lt.u32.totalorder %s650_s6, %s646_s15  ;;  %p654_p8 = scmp.lt.u32.totalorder %s646_s15, %s929_s28 }
 0x18d   : > { %p648_p11 = pnand %p647_p9, %p993_p0 }
 0x18e   : > { %p653_p5 = por %p652_p13, %p651_p6 }
 0x18f   : > { %p649_p3 = pneg %p648_p11 }
 0x190   : > { %p655_p7 = por %p654_p8, %p653_p5 }
 0x192   : > { %p656_p4 = pnand %p655_p7, %p649_p3 }
 0x194   : > { %659 = shalt.err (!%p656_p4)
}
 0x195   : > { %499 = dma.vmem_to_hbm [thread:$0]  (%p993_p0), %s931_s30, 16, %s929_s28, %s358_s25  }
 0x196 PF: > { %s383_s16 = sand.u32 1, %s698_s9   ;;  %p994_p10 = scmp.ne.s32.totalorder %s986_s24, 0 }
 0x197   : > { %p995_p12 = scmp.ge.s32.totalorder %s718_s14, 2  ;;  %s384_s21 = scalar_lea.sflag [#allocation4], %s383_s16 }
 0x199   : > { %p509_p1 = pnand %p995_p12, %p994_p10 }
 0x19b   : > { %693 = dma.done.wait (!%p509_p1), %s384_s21, 16  }
 0x19c   : > { %695 = vsyncadd (!%p509_p1), %s384_s21, 4294967280  ;;  %s21_s14 = sadd.s32 1, %s718_s14   ;;  %s996_s9 = smov %s702_s10 }
 0x19d   : > { %p18_p2 = scmp.ge.s32.totalorder %s21_s14, 4   ;;  %s997_s10 = smov %s706_s11 }
 0x19e   : > { %s998_s11 = smov %s795_s23  ;;  %s999_s12 = smov %s714_s13 }
 0x19f   : > { %s1000_s13 = smov %s1002_s17  ;;  %20 = sbr.rel (!%p18_p2) target bundleno = 8 (0x8), region = 86 }
 0x1a6   :  { %388 = vsyncpa [#allocation3], 1 }
 0x1a7   :  { %390 = vsyncpa [#allocation3 + $0x1], 1 }
 0x1a8   :  { %391 = vsyncpa [#allocation6], 1 }
 0x1a9   :  { %393 = vsyncpa [#allocation6 + $0x1], 1 }
 0x1aa   :  { %394 = vsyncpa [#allocation4], 1 }
 0x1ab   :  { %396 = vsyncpa [#allocation4 + $0x1], 1 }

</bundles_post_ra>
